<compile_context>
chip_gen: v7x
topology: tpu7x:2x2x1
jax: 0.10.0
libtpu: 0.0.40
codegen_flags: <defaults>
</compile_context>

<pallas_src>
import functools

import jax
import jax.numpy as jnp
from jax.experimental import pallas as pl
from jax.experimental.pallas import tpu as pltpu

# -----------------------------------------------------------------------------
# Fixed geometry.  The module requires a 28x28 input (AvgPool2d(6) at the end).
# -----------------------------------------------------------------------------
C = 16              # channel axis padded to 16 (sublane axis of the layout)
GRID = 28           # per-sample storage grid (28x28 columns, reused by every layer)
RPS = GRID * GRID   # columns per sample
HEAD = 128          # zero columns in front (emulates zero-padding for convblock7)
BN_EPS = 1e-5


def _ms(n):
    """Total lane columns, rounded up to a multiple of 128 (clean vreg tiling)."""
    return ((HEAD + n * RPS + 127) // 128) * 128


# -----------------------------------------------------------------------------
# Roll-convention probe: we need shifted(x, s)[:, j] == x[:, j + s].  Resolve the
# rotation direction of pltpu.roll once, empirically, with a tiny kernel.
# -----------------------------------------------------------------------------
def _roll_probe_kernel(x_ref, o_ref):
    o_ref[...] = pltpu.roll(x_ref[...], 1, axis=1)


_ROLL_SIGN = None


def _get_roll_sign():
    global _ROLL_SIGN
    if _ROLL_SIGN is None:
        with jax.ensure_compile_time_eval():
            x = jnp.arange(8 * 256, dtype=jnp.float32).reshape(8, 256)
            y = pl.pallas_call(
                _roll_probe_kernel,
                out_shape=jax.ShapeDtypeStruct((8, 256), jnp.float32),
            )(x)
            if bool(jnp.array_equal(y, jnp.roll(x, 1, axis=1))):
                _ROLL_SIGN = -1   # pltpu.roll(x, a)[j] == x[j - a]  (jnp.roll convention)
            elif bool(jnp.array_equal(y, jnp.roll(x, -1, axis=1))):
                _ROLL_SIGN = 1    # pltpu.roll(x, a)[j] == x[j + a]
            else:
                raise RuntimeError("unexpected pltpu.roll semantics")
    return _ROLL_SIGN


# -----------------------------------------------------------------------------
# The fused Net_B kernel.
#   layout: every array of activations is (C=16 channels, ms columns) where the
#   column HEAD + n*784 + h*28 + w holds position (h, w) of sample n.
# -----------------------------------------------------------------------------
def _net_b_kernel(x_ref, w33_ref, w3_ref, w8t_ref, gam_ref, bet_ref, msk_ref,
                  gsel_ref, o_ref, *, n_batch, roll_sign):
    ms = x_ref.shape[1]

    def shifted(x, s):
        # y[:, j] = x[:, j + s].  Wrap-around only ever touches columns that are
        # masked out / never read for valid output positions (HEAD >= 58).
        if s == 0:
            return x
        return pltpu.roll(x, (roll_sign * s) % ms, axis=1)

    def conv3x3(x, widx, shifts):
        acc = jnp.zeros((C, ms), jnp.float32)
        for t in range(9):
            acc = acc + jnp.dot(w33_ref[widx, t], shifted(x, shifts[t]),
                                preferred_element_type=jnp.float32)
        return acc

    def relu_bn(y, idx, midx, count):
        # PyTorch convblock order: Conv2d -> ReLU -> BatchNorm2d (train mode).
        y = jnp.maximum(y, 0.0)
        mask = msk_ref[midx]                           # (1, ms) validity mask
        y = y * mask
        inv_n = 1.0 / float(count)
        mu = jnp.sum(y, axis=1, keepdims=True) * inv_n                 # (C, 1)
        var = jnp.maximum(
            jnp.sum(y * y, axis=1, keepdims=True) * inv_n - mu * mu, 0.0)
        y = (y - mu) * jax.lax.rsqrt(var + BN_EPS) * gam_ref[idx] + bet_ref[idx]
        return y * mask                                # keep invalid columns at 0

    taps1 = [kh * GRID + kw for kh in range(3) for kw in range(3)]        # dilation 1
    taps2 = [2 * s for s in taps1]                                        # dilation 2
    taps2p = [2 * ((kh - 1) * GRID + (kw - 1))                            # dilation 2, pad=1
              for kh in range(3) for kw in range(3)]

    x = x_ref[...]                                                        # (16, ms)
    x = relu_bn(conv3x3(x, 0, taps1), 0, 0, n_batch * 26 * 26)            # convblock1
    x = relu_bn(conv3x3(x, 1, taps1), 1, 1, n_batch * 24 * 24)            # convblock2
    x = jnp.dot(w3_ref[...], x, preferred_element_type=jnp.float32)       # convblock3 (1x1)
    x = jnp.maximum(jnp.maximum(shifted(x, 0), shifted(x, 1)),            # MaxPool2d(2, 2)
                    jnp.maximum(shifted(x, GRID), shifted(x, GRID + 1)))
    x = relu_bn(conv3x3(x, 2, taps2), 2, 2, n_batch * 10 * 10)            # convblock4
    x = relu_bn(conv3x3(x, 3, taps2), 3, 3, n_batch * 8 * 8)              # convblock5
    x = relu_bn(conv3x3(x, 4, taps2), 4, 4, n_batch * 6 * 6)              # convblock6
    x = relu_bn(conv3x3(x, 5, taps2p), 5, 4, n_batch * 6 * 6)             # convblock7

    # GAP (AvgPool2d(6)) via selector matmul, then 1x1 head conv + log_softmax.
    gap = jnp.dot(x, gsel_ref[...], preferred_element_type=jnp.float32)   # (16, N)
    logits = jnp.dot(w8t_ref[...], gap, preferred_element_type=jnp.float32)  # (10, N)
    z = logits - jnp.max(logits, axis=0, keepdims=True)
    o_ref[...] = z - jnp.log(jnp.sum(jnp.exp(z), axis=0, keepdims=True))


# -----------------------------------------------------------------------------
# Plain-JAX (tiny, once-per-call) packing of parameters / constants.
# -----------------------------------------------------------------------------
def _pad_conv_weight(w):
    """PyTorch (cout, cin, kh, kw) -> (kh*kw, 16, 16) per-tap matrices."""
    cout, cin, kh, kw = w.shape
    wt = jnp.transpose(w, (2, 3, 0, 1)).reshape(kh * kw, cout, cin)
    return jnp.pad(wt.astype(jnp.float32), ((0, 0), (0, C - cout), (0, C - cin)))


def _pad_bn_param(v):
    return jnp.pad(v.astype(jnp.float32), (0, C - v.shape[0])).reshape(C, 1)


def _column_coords(n, ms):
    col = jnp.arange(ms)
    r = col - HEAD
    smp = r // RPS
    rr = r - smp * RPS
    return smp, rr // GRID, rr % GRID, (r >= 0) & (smp < n)


def _valid_mask(n, ms, hv, wv, dil):
    _, h, w, in_batch = _column_coords(n, ms)
    ok = (in_batch & (h % dil == 0) & (w % dil == 0)
          & (h // dil < hv) & (w // dil < wv))
    return ok.astype(jnp.float32)


def _gap_selector(n, ms):
    smp, _, _, _ = _column_coords(n, ms)
    base = _valid_mask(n, ms, 6, 6, 2)                          # conv7 valid 6x6
    onehot = (smp[:, None] == jnp.arange(n)[None, :])
    return (base[:, None] * onehot) / 36.0                      # (ms, N)


def net_b_forward(params, x_nchw):
    """Net_B forward (training-mode BatchNorm).  x_nchw: (N, 1, 28, 28) float32."""
    n = x_nchw.shape[0]
    ms = _ms(n)
    roll_sign = _get_roll_sign()

    x_cols = x_nchw.astype(jnp.float32).reshape(n * RPS)
    row0 = jnp.zeros((ms,), jnp.float32).at[HEAD:HEAD + n * RPS].set(x_cols)
    x_in = jnp.zeros((C, ms), jnp.float32).at[0].set(row0)      # channel 0 = gray

    w33 = jnp.stack([_pad_conv_weight(params[k])
                     for k in ("w1", "w2", "w4", "w5", "w6", "w7")])     # (6, 9, 16, 16)
    w3 = _pad_conv_weight(params["w3"])[0]                               # (16, 16)
    w8t = jnp.pad(params["w8"][:, :, 0, 0].astype(jnp.float32),
                  ((0, 0), (0, C - params["w8"].shape[1])))              # (10, 16)
    gam = jnp.stack([_pad_bn_param(params[k])
                     for k in ("g1", "g2", "g4", "g5", "g6", "g7")])     # (6, 16, 1)
    bet = jnp.stack([_pad_bn_param(params[k])
                     for k in ("b1", "b2", "b4", "b5", "b6", "b7")])     # (6, 16, 1)
    masks = jnp.stack([_valid_mask(n, ms, 26, 26, 1),
                       _valid_mask(n, ms, 24, 24, 1),
                       _valid_mask(n, ms, 10, 10, 2),
                       _valid_mask(n, ms, 8, 8, 2),
                       _valid_mask(n, ms, 6, 6, 2)])[:, None, :]         # (5, 1, ms)
    gsel = _gap_selector(n, ms)                                          # (ms, N)

    out_t = pl.pallas_call(
        functools.partial(_net_b_kernel, n_batch=n, roll_sign=roll_sign),
        out_shape=jax.ShapeDtypeStruct((10, n), jnp.float32),
    )(x_in, w33, w3, w8t, gam, bet, masks, gsel)
    return out_t.T                                                       # (N, 10) log-probs


# -----------------------------------------------------------------------------
# Deterministic PyTorch-like parameters (BN gamma=1, beta=0 as at init).
# -----------------------------------------------------------------------------
def init_params(key):
    def conv_w(k, cout, cin, kh, kw):
        bound = 1.0 / jnp.sqrt(jnp.float32(cin * kh * kw))
        return jax.random.uniform(k, (cout, cin, kh, kw), jnp.float32, -bound, bound)

    ks = jax.random.split(key, 8)
    return {
        "w1": conv_w(ks[0], 16, 1, 3, 3), "g1": jnp.ones(16), "b1": jnp.zeros(16),
        "w2": conv_w(ks[1], 16, 16, 3, 3), "g2": jnp.ones(16), "b2": jnp.zeros(16),
        "w3": conv_w(ks[2], 10, 16, 1, 1),
        "w4": conv_w(ks[3], 16, 10, 3, 3), "g4": jnp.ones(16), "b4": jnp.zeros(16),
        "w5": conv_w(ks[4], 10, 16, 3, 3), "g5": jnp.ones(10), "b5": jnp.zeros(10),
        "w6": conv_w(ks[5], 10, 10, 3, 3), "g6": jnp.ones(10), "b6": jnp.zeros(10),
        "w7": conv_w(ks[6], 10, 10, 3, 3), "g7": jnp.ones(10), "b7": jnp.zeros(10),
        "w8": conv_w(ks[7], 10, 10, 1, 1),
    }


# -----------------------------------------------------------------------------
# Pure-JAX/XLA reference of the PyTorch module (for the correctness check).
# -----------------------------------------------------------------------------
def net_b_reference(params, x):
    prec = jax.lax.Precision.HIGHEST

    def conv(y, w, pad):
        return jax.lax.conv_general_dilated(
            y, w, window_strides=(1, 1), padding=[(pad, pad), (pad, pad)],
            dimension_numbers=("NCHW", "OIHW", "NCHW"), precision=prec)

    def bn(y, g, b):
        mu = jnp.mean(y, axis=(0, 2, 3), keepdims=True)
        var = jnp.mean(jnp.square(y - mu), axis=(0, 2, 3), keepdims=True)
        return ((y - mu) * jax.lax.rsqrt(var + BN_EPS)
                * g.reshape(1, -1, 1, 1) + b.reshape(1, -1, 1, 1))

    def block(y, w, g, b, pad=0):
        return bn(jax.nn.relu(conv(y, w, pad)), g, b)

    y = block(x, params["w1"], params["g1"], params["b1"])
    y = block(y, params["w2"], params["g2"], params["b2"])
    y = conv(y, params["w3"], 0)
    y = jax.lax.reduce_window(y, -jnp.inf, jax.lax.max,
                              (1, 1, 2, 2), (1, 1, 2, 2), "VALID")
    y = block(y, params["w4"], params["g4"], params["b4"])
    y = block(y, params["w5"], params["g5"], params["b5"])
    y = block(y, params["w6"], params["g6"], params["b6"])
    y = block(y, params["w7"], params["g7"], params["b7"], pad=1)
    y = jnp.mean(y, axis=(2, 3))                                          # GAP 6x6 -> 1x1
    logits = jnp.einsum("nc,oc->no", y, params["w8"][:, :, 0, 0], precision=prec)
    return jax.nn.log_softmax(logits, axis=-1)


if __name__ == "__main__":
    key = jax.random.PRNGKey(0)
    pkey, xkey = jax.random.split(key)
    params = init_params(pkey)
    x = jax.random.normal(xkey, (2, 1, 28, 28), jnp.float32)   # MNIST-like input

    _get_roll_sign()                         # resolve roll convention eagerly, pre-jit

    out = jax.block_until_ready(jax.jit(net_b_forward)(params, x))
    assert out.shape == (2, 10)

    # log_softmax rows are normalised probabilities
    assert bool(jnp.allclose(jnp.sum(jnp.exp(out), axis=-1), 1.0, atol=1e-4))
    # matches a plain-JAX reference of the PyTorch module
    ref = net_b_reference(params, x)
    max_err = float(jnp.max(jnp.abs(out - ref)))
    assert max_err < 1e-1, f"kernel/reference mismatch: max_err={max_err}"
    print("KERNEL_OK")
</pallas_src>

<mosaic_0001>
module attributes {stable_mosaic.version = 11 : i64} {
  func.func @_roll_probe_kernel(%arg0: memref<8x256xf32, #tpu.memory_space<vmem>>, %arg1: memref<8x256xf32, #tpu.memory_space<vmem>>) attributes {dimension_semantics = [], scalar_prefetch = 0 : i64, scratch_operands = 0 : i64, tpu.core_type = #tpu.core_type<tc>} {
    %c0 = arith.constant 0 : index
    %c0_0 = arith.constant 0 : index
    %0 = vector.load %arg0[%c0, %c0_0] : memref<8x256xf32, #tpu.memory_space<vmem>>, vector<8x256xf32>
    %c1_i32 = arith.constant 1 : i32
    %1 = tpu.dynamic_rotate %0 by %c1_i32 dim 1 : vector<8x256xf32>, i32 -> vector<8x256xf32>
    %c0_1 = arith.constant 0 : index
    %c0_2 = arith.constant 0 : index
    %2 = vector.load %arg1[%c0_1, %c0_2] : memref<8x256xf32, #tpu.memory_space<vmem>>, vector<8x256xf32>
    tpu.vector_store %arg1[%c0_1, %c0_2], %1 {strides = array<i32>} : memref<8x256xf32, #tpu.memory_space<vmem>>, vector<8x256xf32>,
    return
  }
}

</mosaic_0001>

<bundles_post_ra>
// kernel: tpu_custom_call.1
= control target key start
LH: loop header
LB: loop body
LE: loop exit
PB: predicated region body
PF: predicated region fallthrough
CT: control target
= control target key end

     0   :  { %6 = vsyncpa [#allocation3], 0  ;;  %s137_s0 = inlined_call_operand.hbm [shape: f32[8,256], index: 0, kind: input, shape index: {}]   ;;  %s138_s1 = inlined_call_operand.hbm [shape: f32[8,256], index: 1, kind: output, shape index: {}]  }
   0x1   :  { %7 = vsyncpa [#allocation4], 0  ;;  %s100_s6 = smov [#allocation2]   ;;  %s52_s10 = scalar_lea.hbm %s137_s0, 256 }
   0x2   :  { %s14_s7 = sshll.u32 %s100_s6, 4  ;;  %p53_p0 = scmp.ne.s32.totalorder %s137_s0, %s52_s10  ;;  %s15_s7 = int_to_ptr.vmem [resolvable:$true] %s14_s7 }
   0x3   :  { %p56_p1 = scmp.lt.u32.totalorder %s52_s10, %s137_s0 }
   0x5   :  { %p58_p2 = pnand %p56_p1, %p53_p0 }
   0x7   :  { %61 = shalt.err (!%p58_p2)
}
   0x8   :  { %s62_s15 = scalar_lea.vmem %s15_s7, 256  ;;  %p67_p4 = scmp.lt.s32.totalorder %s15_s7, %s15_s7 }
   0x9   :  { %p63_p3 = scmp.ne.s32.totalorder %s15_s7, %s62_s15  ;;  %p68_p5 = scmp.lt.s32.totalorder %s62_s15, %s62_s15 }
   0xb   :  { %p69_p6 = por %p68_p5, %p67_p4 }
   0xd   :  { %p70_p7 = pnand %p69_p6, %p63_p3 }
   0xf   :  { %73 = shalt.err (!%p70_p7)
}
  0x10   :  { %17 = dma.hbm_to_vmem [thread:$0]  %s137_s0, 256, %s15_s7, [#allocation3]  }
  0x11   :  { %96 = dma.done.wait [#allocation3], 256  }
  0x12   :  { %97 = vsyncadd [#allocation3], 4294967040  ;;  %v21_v0 = vld [vmem:[#allocation2] sm:$0xff]  ;;  %s101_s18 = smov 1   ;;  %v22_v1 = vld [vmem:[#allocation2 + $0x8] sm:$0xff]  ;;  %v27_v2 = vlaneseq  ;;  %s102_s19 = smov [#allocation5]  }
  0x13   :  { %23 = vrot.lane.b32.xlu0 %v21_v0, %s101_s18  ;;  %s40_s20 = sshll.u32 %s102_s19, 4  ;;  %s41_s20 = int_to_ptr.vmem [resolvable:$true] %s40_s20 }
  0x14   :  { %v28_v3 = vand.u32 127, %v27_v2  ;;  %s74_s0 = scalar_lea.vmem %s41_s20, 256  ;;  %p79_p9 = scmp.lt.s32.totalorder %s41_s20, %s41_s20 }
  0x15   :  { %p75_p8 = scmp.ne.s32.totalorder %s41_s20, %s74_s0  ;;  %p80_p10 = scmp.lt.s32.totalorder %s74_s0, %s74_s0 }
  0x16   :  { %vm29_vm0 = vcmp.lt.s32.totalorder %v28_v3, 1 }
  0x17   :  { %25 = vrot.lane.b32.xlu0 %v22_v1, %s101_s18  ;;  %p81_p11 = por %p80_p10, %p79_p9 }
  0x19   :  { %p82_p12 = pnand %p81_p11, %p75_p8 }
  0x85   :  { %v24_v4 = vpop.permute.xlu0 %23 }
  0x89   :  { %v26_v5 = vpop.permute.xlu0 %25 }
  0x8a   :  { %v30_v6 = vsel %vm29_vm0, %v24_v4, %v26_v5  ;;  %v31_v7 = vsel %vm29_vm0, %v26_v5, %v24_v4 }
  0x8b   :  { %32 = vst [vmem:[#allocation5] sm:$0xff] %v31_v7  ;;  %33 = vst [vmem:[#allocation5 + $0x8] sm:$0xff] %v30_v6 }
  0x8c   :  { %85 = shalt.err (!%p82_p12)
}
  0x8d   :  { %s86_s23 = scalar_lea.hbm %s138_s1, 256 }
  0x8e   :  { %p87_p13 = scmp.ne.s32.totalorder %s138_s1, %s86_s23  ;;  %p90_p0 = scmp.lt.u32.totalorder %s86_s23, %s138_s1 }
  0x90   :  { %p92_p1 = pnand %p90_p0, %p87_p13 }
  0x92   :  { %95 = shalt.err (!%p92_p1)
}
  0x93   :  { %43 = dma.vmem_to_hbm [thread:$0]  %s41_s20, 256, %s138_s1, [#allocation4]  }
  0x94   :  { %98 = dma.done.wait [#allocation4], 256  }
  0x95   :  { %99 = vsyncadd [#allocation4], 4294967040 }
  0x96   :  { %47 = vsyncpa [#allocation3], 1 }
  0x97   :  { %48 = vsyncpa [#allocation4], 1 }

</bundles_post_ra>
